<compile_context>
chip_gen: v7x
topology: tpu7x:2x2x1
jax: 0.10.0
libtpu: 0.0.40
codegen_flags: <defaults>
</compile_context>

<pallas_src>
import jax
import jax.numpy as jnp
from jax.experimental import pallas as pl
from jax.experimental.pallas import tpu as pltpu


def _lsu_kernel(x_ref, ch_ref, w_ref, b_ref, o_ref):
    # Children reduction over the leading (non-lane/sublane) axis: cheap VPU
    # adds, no XLU traffic.  Accumulate in f32 to preserve torch-f32 semantics
    # even if inputs are later moved to bf16.
    sum_children = jnp.sum(ch_ref[...].astype(jnp.float32), axis=0)       # (Bt, M)
    x = x_ref[...].astype(jnp.float32)                                    # (Bt, D_in)

    # Single fused GEMM: [x | sum_children] @ [w1 ; w2]  (K = D_in + M).
    xk = jnp.concatenate([x, sum_children], axis=-1)                      # (Bt, D_in+M)
    out = jnp.dot(xk, w_ref[...], preferred_element_type=jnp.float32)     # (Bt, M)
    out = out + b_ref[...]                                                # bias bcast (1, M)
    o_ref[...] = out.astype(o_ref.dtype)


def linear_sum_unit(inputs, children_stacked, w1, b1, w2, b2, *, block_b=512):
    """inputs: (B, input_dim); children_stacked: (C, B, memory_dim).
    w1: (input_dim, memory_dim), b1: (memory_dim,),
    w2: (memory_dim, memory_dim), b2: (memory_dim,)."""
    B, d_in = inputs.shape
    C, _, M = children_stacked.shape

    # Fuse weights/bias once on the host side (static parameters).
    w_cat = jnp.concatenate([w1, w2], axis=0)        # (d_in + M, M)
    b_cat = (b1 + b2).reshape(1, M)                  # (1, M)

    # Batch tiling: big tiles amortize the ~0.35 us per-grid-step overhead;
    # clamp to B for small problems and pad so the grid divides evenly.
    block_b = max(8, min(block_b, B))
    Bp = pl.cdiv(B, block_b) * block_b
    if Bp != B:
        inputs = jnp.pad(inputs, ((0, Bp - B), (0, 0)))
        children_stacked = jnp.pad(children_stacked, ((0, 0), (0, Bp - B), (0, 0)))

    grid = (Bp // block_b,)

    out = pl.pallas_call(
        _lsu_kernel,
        out_shape=jax.ShapeDtypeStruct((Bp, M), inputs.dtype),
        grid=grid,
        in_specs=[
            pl.BlockSpec((block_b, d_in), lambda i: (i, 0)),       # x tile
            pl.BlockSpec((C, block_b, M), lambda i: (0, i, 0)),    # children tile
            pl.BlockSpec((d_in + M, M), lambda i: (0, 0)),         # resident fused weight
            pl.BlockSpec((1, M), lambda i: (0, 0)),                # resident fused bias
        ],
        out_specs=pl.BlockSpec((block_b, M), lambda i: (i, 0)),
        compiler_params=pltpu.CompilerParams(
            dimension_semantics=("parallel",),
        ),
    )(inputs, children_stacked, w_cat, b_cat)

    return out[:B]


if __name__ == "__main__":
    # Small shapes consistent with the module: batch=8, input_dim=16,
    # memory_dim=32, num_children=3 (arities argument is unused by forward).
    B, D_IN, D_MEM, N_CH = 8, 16, 32, 3
    key = jax.random.PRNGKey(0)
    k_x, k_ch, k_w1, k_b1, k_w2, k_b2 = jax.random.split(key, 6)

    x = jax.random.normal(k_x, (B, D_IN), dtype=jnp.float32)
    children = jax.random.normal(k_ch, (N_CH, B, D_MEM), dtype=jnp.float32)

    # Deterministic parameter init (uniform like torch's Linear default scale).
    s1 = 1.0 / jnp.sqrt(D_IN)
    s2 = 1.0 / jnp.sqrt(D_MEM)
    w1 = jax.random.uniform(k_w1, (D_IN, D_MEM), jnp.float32, -s1, s1)
    b1 = jax.random.uniform(k_b1, (D_MEM,), jnp.float32, -s1, s1)
    w2 = jax.random.uniform(k_w2, (D_MEM, D_MEM), jnp.float32, -s2, s2)
    b2 = jax.random.uniform(k_b2, (D_MEM,), jnp.float32, -s2, s2)

    out = linear_sum_unit(x, children, w1, b1, w2, b2)
    jax.block_until_ready(out)

    # Reference check in plain JAX.
    ref = x @ w1 + b1 + jnp.sum(children, axis=0) @ w2 + b2
    assert out.shape == (B, D_MEM)
    assert jnp.allclose(out, ref, atol=1e-5, rtol=1e-5)

    print("KERNEL_OK")
</pallas_src>

<mosaic_0001>
module attributes {stable_mosaic.version = 11 : i64} {
  func.func @_lsu_kernel(%arg0: i32, %arg1: memref<8x16xf32, #tpu.memory_space<vmem>>, %arg2: memref<3x8x32xf32, #tpu.memory_space<vmem>>, %arg3: memref<48x32xf32, #tpu.memory_space<vmem>>, %arg4: memref<1x32xf32, #tpu.memory_space<vmem>>, %arg5: memref<8x32xf32, #tpu.memory_space<vmem>>) attributes {dimension_semantics = [#tpu.dimension_semantics<parallel>], iteration_bounds = array<i64: 1>, scalar_prefetch = 0 : i64, scratch_operands = 0 : i64, tpu.core_type = #tpu.core_type<tc>, window_params = [{transform_indices = @transform_0, window_bounds = array<i64: 8, 16>}, {transform_indices = @transform_1, window_bounds = array<i64: 3, 8, 32>}, {pipeline_mode = #tpu.pipeline_mode<synchronous>, transform_indices = @transform_2, window_bounds = array<i64: 48, 32>}, {pipeline_mode = #tpu.pipeline_mode<synchronous>, transform_indices = @transform_3, window_bounds = array<i64: 1, 32>}, {transform_indices = @transform_4, window_bounds = array<i64: 8, 32>}]} {
    %c0 = arith.constant 0 : index
    %c0_0 = arith.constant 0 : index
    %c0_1 = arith.constant 0 : index
    %0 = vector.load %arg2[%c0, %c0_0, %c0_1] : memref<3x8x32xf32, #tpu.memory_space<vmem>>, vector<3x8x32xf32>
    %cst = arith.constant dense<0.000000e+00> : vector<8x32xf32>
    %1 = vector.multi_reduction <add>, %0, %cst [0] : vector<3x8x32xf32> to vector<8x32xf32>
    %c0_2 = arith.constant 0 : index
    %c0_3 = arith.constant 0 : index
    %2 = vector.load %arg1[%c0_2, %c0_3] : memref<8x16xf32, #tpu.memory_space<vmem>>, vector<8x16xf32>
    %3 = tpu.concatenate %2, %1 in 1 : vector<8x16xf32>, vector<8x32xf32> -> vector<8x48xf32>
    %c0_4 = arith.constant 0 : index
    %c0_5 = arith.constant 0 : index
    %4 = vector.load %arg3[%c0_4, %c0_5] : memref<48x32xf32, #tpu.memory_space<vmem>>, vector<48x32xf32>
    %cst_6 = arith.constant dense<0.000000e+00> : vector<8x32xf32>
    %5 = tpu.matmul %3, %4, %cst_6 {dimension_numbers = #tpu.dot_dimension_numbers<[1], [0], [0], [1], [0, 0, 1, 1], [], []>} : vector<8x48xf32>, vector<48x32xf32>, vector<8x32xf32> -> vector<8x32xf32>
    %c0_7 = arith.constant 0 : index
    %c0_8 = arith.constant 0 : index
    %6 = vector.load %arg4[%c0_7, %c0_8] : memref<1x32xf32, #tpu.memory_space<vmem>>, vector<1x32xf32>
    %7 = vector.broadcast %6 : vector<1x32xf32> to vector<8x32xf32>
    %8 = arith.addf %5, %7 : vector<8x32xf32>
    %c0_9 = arith.constant 0 : index
    %c0_10 = arith.constant 0 : index
    %9 = vector.load %arg5[%c0_9, %c0_10] : memref<8x32xf32, #tpu.memory_space<vmem>>, vector<8x32xf32>
    tpu.vector_store %arg5[%c0_9, %c0_10], %8 {strides = array<i32>} : memref<8x32xf32, #tpu.memory_space<vmem>>, vector<8x32xf32>,
    return
  }
  func.func @transform_0(%arg0: i32) -> (i32, i32) {
    %c0_i32 = arith.constant 0 : i32
    %c0_i32_0 = arith.constant 0 : i32
    return %arg0, %c0_i32 : i32, i32
  }
  func.func @transform_1(%arg0: i32) -> (i32, i32, i32) {
    %c0_i32 = arith.constant 0 : i32
    %c0_i32_0 = arith.constant 0 : i32
    %c0_i32_1 = arith.constant 0 : i32
    return %c0_i32, %arg0, %c0_i32_0 : i32, i32, i32
  }
  func.func @transform_2(%arg0: i32) -> (i32, i32) {
    %c0_i32 = arith.constant 0 : i32
    %c0_i32_0 = arith.constant 0 : i32
    %c0_i32_1 = arith.constant 0 : i32
    return %c0_i32, %c0_i32_0 : i32, i32
  }
  func.func @transform_3(%arg0: i32) -> (i32, i32) {
    %c0_i32 = arith.constant 0 : i32
    %c0_i32_0 = arith.constant 0 : i32
    %c0_i32_1 = arith.constant 0 : i32
    return %c0_i32, %c0_i32_0 : i32, i32
  }
  func.func @transform_4(%arg0: i32) -> (i32, i32) {
    %c0_i32 = arith.constant 0 : i32
    %c0_i32_0 = arith.constant 0 : i32
    return %arg0, %c0_i32 : i32, i32
  }
}

</mosaic_0001>

<bundles_post_ra>
// kernel: tpu_custom_call.1
= control target key start
LH: loop header
LB: loop body
LE: loop exit
PB: predicated region body
PF: predicated region fallthrough
CT: control target
= control target key end

     0   :  { %vm21_vm0 = vcmask 261120   ;;  %v198_v6 = vmov 0.0|0.0   ;;  %vm199_vm1 = vmmov 0   ;;  %v200_v15 = vmov 0.0   ;;  %s277_s0 = inlined_call_operand.vmem [shape: f32[8,16], index: 0, kind: input, shape index: {}]   ;;  %s278_s1 = inlined_call_operand.vmem [shape: f32[3,8,32], index: 1, kind: input, shape index: {}]   ;;  %s279_s2 = inlined_call_operand.vmem [shape: f32[48,32], index: 2, kind: input, shape index: {}]   ;;  %s280_s3 = inlined_call_operand.vmem [shape: f32[1,32], index: 3, kind: input, shape index: {}]   ;;  %s281_s4 = inlined_call_operand.hbm [shape: f32[8,32], index: 4, kind: output, shape index: {}]  }
   0x1   :  { %v18_v0 = vld [vmem:[%s278_s1] sm:$0xff]  ;;  %v19_v1 = vld [vmem:[%s278_s1 + $0x8] sm:$0xff]  ;;  %v20_v2 = vld [vmem:[%s278_s1 + $0x10] sm:$0xff]  ;;  %160 = vmatprep.subr.bf16.mxu0 %v198_v6  ;;  %157 = vmatprep.mubr.msk.f32.mxu0 %vm199_vm1, %v200_v15 }
   0x2   :  { %v22_v3 = vsel %vm21_vm0, %v18_v0, 0.0  ;;  %v23_v4 = vsel %vm21_vm0, %v19_v1, 0.0  ;;  %v25_v5 = vsel %vm21_vm0, %v20_v2, 0.0  ;;  %v34_v7 = vld [vmem:[%s279_s2] sm:$0xff]  ;;  %v35_v8 = vld [vmem:[%s279_s2 + $0x8] sm:$0xff]  ;;  %v36_v9 = vld [vmem:[%s279_s2 + $0x10] sm:$0xff] }
   0x3   :  { %v24_v10 = vadd.f32 %v23_v4, %v22_v3  ;;  %v161_v11 = vpack.c.bf16 %v35_v8, %v34_v7  ;;  %v37_v12 = vld [vmem:[%s279_s2 + $0x18] sm:$0xff] }
   0x4   :  { %v164_v14 = vpack.c.bf16 %v37_v12, %v36_v9 }
   0x5   :  { %v26_v13 = vadd.f32 %v25_v5, %v24_v10  ;;  %162 = vmatpush3.bf16.msra.mxu0 %v161_v11 }
   0x6   :  { %9 = vsyncpa [#allocation3], 0  ;;  %163 = vmatprep.subr.bf16.mxu0 %v198_v6  ;;  %v38_v16 = vld [vmem:[%s279_s2 + $0x20] sm:$0xff]  ;;  %v39_v17 = vld [vmem:[%s279_s2 + $0x28] sm:$0xff]  ;;  %s201_s6 = smov 16   ;;  %vm32_vm2 = vcmask 130048  }
   0x7   :  { %29 = vrot.lane.b32.xlu0 %v26_v13, %s201_s6  ;;  %v167_v18 = vpack.c.bf16 %v39_v17, %v38_v16  ;;  %v27_v19 = vld [vmem:[%s277_s0] sm:$0xff]  ;;  %vm47_vm3 = vcmask 392192   ;;  %s202_s2 = smov [#allocation2]  }
   0x8   :  { %v136_v22 = vld [vmem:[%s280_s3] ss:$0 sm:$0xff]  ;;  %s128_s11 = sshll.u32 %s202_s2, 4  ;;  %s129_s11 = int_to_ptr.vmem [resolvable:$true] %s128_s11 }
   0x9   :  { %165 = vmatpush3.bf16.msra.mxu0 %v164_v14  ;;  %s174_s12 = scalar_lea.vmem %s129_s11, 128  ;;  %p179_p1 = scmp.lt.s32.totalorder %s129_s11, %s129_s11 }
   0xa   :  { %166 = vmatprep.subr.bf16.mxu0 %v198_v6  ;;  %p175_p0 = scmp.ne.s32.totalorder %s129_s11, %s174_s12  ;;  %p180_p2 = scmp.lt.s32.totalorder %s174_s12, %s174_s12 }
   0xc   :  { %p181_p3 = por %p180_p2, %p179_p1 }
   0xd   :  { %168 = vmatpush3.bf16.msra.mxu0 %v167_v18 }
   0xe   :  { %p182_p4 = pnand %p181_p3, %p175_p0 }
  0x79   :  { %v30_v20 = vpop.permute.xlu0 %29 }
  0x7a   :  { %v33_v21 = vsel %vm32_vm2, %v27_v19, %v30_v20 }
  0x7b   :  { %158 = vmatmul.mubr.msk.f32.vlgmr.msra.gmra.mrb[0].mxu0 %vm47_vm3, %v33_v21 }
 0x14e   :  { %v117_v23 = vpop.f32.mrb[0].mxu0 }
 0x14f   :  { %v118_v24 = vadd.f32 %v136_v22, %v117_v23  ;;  %v159_v25 = vpop.f32.mrb[1].mxu0 }
 0x151   :  { %121 = vst.msk [vmem:[#allocation2] sm:$0xff] %vm21_vm0, %v118_v24 }
 0x152   :  { %185 = shalt.err (!%p182_p4)
}
 0x153   :  { %s186_s14 = scalar_lea.hbm %s281_s4, 128 }
 0x154   :  { %p187_p5 = scmp.ne.s32.totalorder %s281_s4, %s186_s14  ;;  %p190_p6 = scmp.lt.u32.totalorder %s186_s14, %s281_s4 }
 0x156   :  { %p192_p7 = pnand %p190_p6, %p187_p5 }
 0x158   :  { %195 = shalt.err (!%p192_p7)
}
 0x159   :  { %131 = dma.vmem_to_hbm [thread:$0]  %s129_s11, 128, %s281_s4, [#allocation3]  }
 0x15a   :  { %196 = dma.done.wait [#allocation3], 128  }
 0x15b   :  { %197 = vsyncadd [#allocation3], 4294967168 }
 0x15c   :  { %135 = vsyncpa [#allocation3], 1 }

</bundles_post_ra>
